<compile_context>
chip_gen: v6e
topology: v6e:2x2x1
jax: 0.10.0
libtpu: 0.0.40
codegen_flags: <defaults>
</compile_context>

<pallas_src>
import functools

import jax
import jax.numpy as jnp
from jax.experimental import pallas as pl
from jax.experimental.pallas import tpu as pltpu

EPS = 1e-6


def _round_up(n, m):
    return ((n + m - 1) // m) * m


def _vmem_limit_bytes():
    """Scoped-VMEM limit: physical capacity minus headroom for compiler scratch."""
    phys = 64 * 1024 * 1024  # conservative default (v7x per-TensorCore VMEM)
    try:
        phys = int(getattr(pltpu.get_tpu_info(), "vmem_capacity_bytes", phys))
    except Exception:
        pass
    # ~48 MiB on v7x, ~112 MiB on v5e/v6e.
    return max(phys - 16 * 1024 * 1024, 32 * 1024 * 1024)


def _pick_row_tile(rows, h_pad, itemsize, sublane, vmem_limit):
    """Row tile giving ~4 MiB x blocks while keeping the pipeline inside VMEM."""
    target_block_bytes = 4 * 1024 * 1024
    rt = max((target_block_bytes // (h_pad * itemsize)) // sublane * sublane, sublane)
    # VMEM per row: double-buffered x-in + out blocks (4 row copies) plus
    # ~2 full-tile f32 intermediates (centered, squared / output expression).
    per_row_bytes = 4 * h_pad * itemsize + 2 * h_pad * 4
    cap = max((vmem_limit // per_row_bytes) // sublane * sublane, sublane)
    rt = min(rt, cap)
    # Never bigger than the (sublane-aligned) row count.
    rt = min(rt, _round_up(rows, sublane))
    return rt


def _layernorm_kernel(x_ref, a2_ref, b2_ref, o_ref, *, h_true, h_pad, exact_recip):
    # x_ref: (rt, Hp)   a2_ref / b2_ref: (1, Hp) f32   o_ref: (rt, Hp)
    x = x_ref[...].astype(jnp.float32)

    # Pad lanes of x are zero-filled by the wrapper, so a plain lane-sum divided
    # by the TRUE feature count is the correct mean.
    mean = jnp.sum(x, axis=-1, keepdims=True) * (1.0 / h_true)
    centered = x - mean

    # After centering, each of the (Hp - H) pad lanes holds exactly -mean, so
    # they contribute (Hp - H) * mean^2 to the square-sum; correct analytically
    # on the (rt, 1) column instead of masking the full tile (saves a full-tile
    # iota, compare and select per grid step).
    sumsq = jnp.sum(centered * centered, axis=-1, keepdims=True)
    if h_pad != h_true:
        sumsq = sumsq - (h_pad - h_true) * (mean * mean)

    # torch.std is UNBIASED: divide by (N - 1).
    var = sumsq * (1.0 / (h_true - 1))
    std = jnp.sqrt(var)

    if exact_recip:
        inv = 1.0 / (std + EPS)                       # exact: matches f32 torch
    else:
        inv = pl.reciprocal(std + EPS, approx=True)   # EUP slot; fine for bf16 out

    # Pad lanes produce garbage here; the wrapper slices them off.
    o_ref[...] = (a2_ref[...] * centered * inv + b2_ref[...]).astype(o_ref.dtype)


def layer_norm(x, a2, b2, *, row_tile=None):
    """LayerNorm forward.  x: (..., H); a2, b2: (H,).  Returns x's shape/dtype."""
    orig_shape = x.shape
    H = int(orig_shape[-1])
    assert H >= 2, "unbiased std (torch.std) needs at least 2 features"

    rows = 1
    for d in orig_shape[:-1]:
        rows *= int(d)

    itemsize = jnp.dtype(x.dtype).itemsize
    sublane = {4: 8, 2: 16, 1: 32}.get(itemsize, 8)

    # Lane-dense feature dim; pad ONLY if H is not already a multiple of 128.
    Hp = _round_up(H, 128)
    x2d = x.reshape(rows, H)
    if Hp != H:
        x2d = jnp.pad(x2d, ((0, 0), (0, Hp - H)))

    # a_2 / b_2 pre-cast to f32 so the kernel consumes them directly.
    a2p = jnp.pad(jnp.asarray(a2, jnp.float32), (0, Hp - H)).reshape(1, Hp)
    b2p = jnp.pad(jnp.asarray(b2, jnp.float32), (0, Hp - H)).reshape(1, Hp)

    vmem_limit = _vmem_limit_bytes()
    if row_tile is None:
        rt = _pick_row_tile(rows, Hp, itemsize, sublane, vmem_limit)
    else:
        assert row_tile % sublane == 0, (
            f"row_tile must be a multiple of {sublane} for dtype {x.dtype}")
        rt = min(row_tile, _round_up(rows, sublane))

    # Exact divide for f32 outputs (approx reciprocal error ~2^-14 would be
    # visible); approx EUP reciprocal otherwise.
    exact_recip = jnp.dtype(x.dtype) == jnp.float32

    kernel = functools.partial(
        _layernorm_kernel, h_true=H, h_pad=Hp, exact_recip=exact_recip)

    out2d = pl.pallas_call(
        kernel,
        out_shape=jax.ShapeDtypeStruct((rows, Hp), x.dtype),
        grid_spec=pltpu.PrefetchScalarGridSpec(
            num_scalar_prefetch=0,
            # Rows are NOT padded: a partial last block (rows % rt != 0) only
            # touches garbage rows whose writes are masked / never observed.
            grid=(pl.cdiv(rows, rt),),
            in_specs=[
                pl.BlockSpec((rt, Hp), lambda i: (i, 0)),
                # a_2 / b_2 are loop-invariant and tiny (1 x Hp); default
                # double-buffering costs only a few KiB of VMEM.
                pl.BlockSpec((1, Hp), lambda i: (0, 0)),
                pl.BlockSpec((1, Hp), lambda i: (0, 0)),
            ],
            out_specs=pl.BlockSpec((rt, Hp), lambda i: (i, 0)),
        ),
        compiler_params=pltpu.CompilerParams(
            dimension_semantics=("parallel",),   # megacore split on v7x
            vmem_limit_bytes=vmem_limit,
        ),
    )(x2d, a2p, b2p)

    if Hp != H:
        out2d = out2d[:, :H]
    return out2d.reshape(orig_shape)


def _reference(x, a2, b2):
    # Pure-JAX mirror of the PyTorch forward (unbiased std, divide by std+eps).
    mean = jnp.mean(x, axis=-1, keepdims=True)
    c = x - mean
    var = jnp.sum(c * c, axis=-1, keepdims=True) / (x.shape[-1] - 1)
    std = jnp.sqrt(var)
    return a2 * c / (std + EPS) + b2


if __name__ == "__main__":
    B, S, H = 2, 8, 32  # features = hidden = 32
    key = jax.random.PRNGKey(0)
    kx, ka, kb = jax.random.split(key, 3)

    x = jax.random.normal(kx, (B, S, H), dtype=jnp.float32)
    # Non-trivial affine params so the a_2 / b_2 path is actually exercised
    # (module init is ones / zeros; any values share the same forward math).
    a2 = 1.0 + 0.1 * jax.random.normal(ka, (H,), dtype=jnp.float32)
    b2 = 0.1 * jax.random.normal(kb, (H,), dtype=jnp.float32)

    out = layer_norm(x, a2, b2)
    out = jax.block_until_ready(out)

    ref = _reference(x, a2, b2)
    assert out.shape == (B, S, H) and out.dtype == x.dtype
    assert jnp.allclose(out, ref, atol=1e-5, rtol=1e-5), "mismatch vs reference"

    print("KERNEL_OK")
</pallas_src>

<mosaic_0001>
module attributes {stable_mosaic.version = 11 : i64} {
  func.func @_layernorm_kernel(%arg0: i32, %arg1: memref<16x128xf32, #tpu.memory_space<vmem>>, %arg2: memref<1x128xf32, #tpu.memory_space<vmem>>, %arg3: memref<1x128xf32, #tpu.memory_space<vmem>>, %arg4: memref<16x128xf32, #tpu.memory_space<vmem>>) attributes {dimension_semantics = [#tpu.dimension_semantics<parallel>], iteration_bounds = array<i64: 1>, scalar_prefetch = 0 : i64, scratch_operands = 0 : i64, tpu.core_type = #tpu.core_type<tc>, window_params = [{transform_indices = @transform_0, window_bounds = array<i64: 16, 128>}, {pipeline_mode = #tpu.pipeline_mode<synchronous>, transform_indices = @transform_1, window_bounds = array<i64: 1, 128>}, {pipeline_mode = #tpu.pipeline_mode<synchronous>, transform_indices = @transform_2, window_bounds = array<i64: 1, 128>}, {transform_indices = @transform_3, window_bounds = array<i64: 16, 128>}]} {
    %c0 = arith.constant 0 : index
    %c0_0 = arith.constant 0 : index
    %0 = vector.load %arg1[%c0, %c0_0] : memref<16x128xf32, #tpu.memory_space<vmem>>, vector<16x128xf32>
    %cst = arith.constant dense<0.000000e+00> : vector<16xf32>
    %1 = vector.multi_reduction <add>, %0, %cst [1] : vector<16x128xf32> to vector<16xf32>
    %2 = vector.shape_cast %1 : vector<16xf32> to vector<16x1xf32>
    %cst_1 = arith.constant 3.125000e-02 : f32
    %3 = vector.broadcast %cst_1 : f32 to vector<16x1xf32>
    %4 = arith.mulf %2, %3 : vector<16x1xf32>
    %5 = vector.broadcast %4 : vector<16x1xf32> to vector<16x128xf32>
    %6 = arith.subf %0, %5 : vector<16x128xf32>
    %7 = arith.mulf %6, %6 : vector<16x128xf32>
    %cst_2 = arith.constant dense<0.000000e+00> : vector<16xf32>
    %8 = vector.multi_reduction <add>, %7, %cst_2 [1] : vector<16x128xf32> to vector<16xf32>
    %9 = vector.shape_cast %8 : vector<16xf32> to vector<16x1xf32>
    %10 = arith.mulf %4, %4 : vector<16x1xf32>
    %cst_3 = arith.constant 9.600000e+01 : f32
    %11 = vector.broadcast %cst_3 : f32 to vector<16x1xf32>
    %12 = arith.mulf %11, %10 : vector<16x1xf32>
    %13 = arith.subf %9, %12 : vector<16x1xf32>
    %cst_4 = arith.constant 0.0322580636 : f32
    %14 = vector.broadcast %cst_4 : f32 to vector<16x1xf32>
    %15 = arith.mulf %13, %14 : vector<16x1xf32>
    %16 = math.sqrt %15 : vector<16x1xf32>
    %cst_5 = arith.constant 9.99999997E-7 : f32
    %17 = vector.broadcast %cst_5 : f32 to vector<16x1xf32>
    %18 = arith.addf %16, %17 : vector<16x1xf32>
    %cst_6 = arith.constant 1.000000e+00 : f32
    %19 = vector.broadcast %cst_6 : f32 to vector<16x1xf32>
    %20 = arith.divf %19, %18 : vector<16x1xf32>
    %c0_7 = arith.constant 0 : index
    %c0_8 = arith.constant 0 : index
    %21 = vector.load %arg2[%c0_7, %c0_8] : memref<1x128xf32, #tpu.memory_space<vmem>>, vector<1x128xf32>
    %22 = vector.broadcast %21 : vector<1x128xf32> to vector<16x128xf32>
    %23 = arith.mulf %22, %6 : vector<16x128xf32>
    %24 = vector.broadcast %20 : vector<16x1xf32> to vector<16x128xf32>
    %25 = arith.mulf %23, %24 : vector<16x128xf32>
    %c0_9 = arith.constant 0 : index
    %c0_10 = arith.constant 0 : index
    %26 = vector.load %arg3[%c0_9, %c0_10] : memref<1x128xf32, #tpu.memory_space<vmem>>, vector<1x128xf32>
    %27 = vector.broadcast %26 : vector<1x128xf32> to vector<16x128xf32>
    %28 = arith.addf %25, %27 : vector<16x128xf32>
    %c0_11 = arith.constant 0 : index
    %c0_12 = arith.constant 0 : index
    %29 = vector.load %arg4[%c0_11, %c0_12] : memref<16x128xf32, #tpu.memory_space<vmem>>, vector<16x128xf32>
    tpu.vector_store %arg4[%c0_11, %c0_12], %28 {strides = array<i32>} : memref<16x128xf32, #tpu.memory_space<vmem>>, vector<16x128xf32>,
    return
  }
  func.func @transform_0(%arg0: i32) -> (i32, i32) {
    %c0_i32 = arith.constant 0 : i32
    %c0_i32_0 = arith.constant 0 : i32
    return %arg0, %c0_i32 : i32, i32
  }
  func.func @transform_1(%arg0: i32) -> (i32, i32) {
    %c0_i32 = arith.constant 0 : i32
    %c0_i32_0 = arith.constant 0 : i32
    %c0_i32_1 = arith.constant 0 : i32
    return %c0_i32, %c0_i32_0 : i32, i32
  }
  func.func @transform_2(%arg0: i32) -> (i32, i32) {
    %c0_i32 = arith.constant 0 : i32
    %c0_i32_0 = arith.constant 0 : i32
    %c0_i32_1 = arith.constant 0 : i32
    return %c0_i32, %c0_i32_0 : i32, i32
  }
  func.func @transform_3(%arg0: i32) -> (i32, i32) {
    %c0_i32 = arith.constant 0 : i32
    %c0_i32_0 = arith.constant 0 : i32
    return %arg0, %c0_i32 : i32, i32
  }
}

</mosaic_0001>

<bundles_post_ra>
// kernel: tpu_custom_call.1
= control target key start
LH: loop header
LB: loop body
LE: loop exit
PB: predicated region body
PF: predicated region fallthrough
CT: control target
= control target key end

     0   :  { %8 = vsyncpa [#allocation3], 0  ;;  %s212_s0 = inlined_call_operand.hbm [shape: f32[16,128], index: 0, kind: input, shape index: {}]   ;;  %s213_s1 = inlined_call_operand.vmem [shape: f32[1,128], index: 1, kind: input, shape index: {}]   ;;  %s214_s2 = inlined_call_operand.vmem [shape: f32[1,128], index: 2, kind: input, shape index: {}]   ;;  %s215_s3 = inlined_call_operand.hbm [shape: f32[16,128], index: 3, kind: output, shape index: {}]  }
   0x1   :  { %9 = vsyncpa [#allocation4], 0  ;;  %s170_s12 = smov [#allocation2]  }
   0x2   :  { %s15_s13 = sshll.u32 %s170_s12, 4  ;;  %s16_s13 = int_to_ptr.vmem [resolvable:$true] %s15_s13 }
   0x3   :  { %s134_s14 = scalar_lea.vmem %s16_s13, 256  ;;  %p139_p1 = scmp.lt.s32.totalorder %s16_s13, %s16_s13 }
   0x4   :  { %p135_p0 = scmp.ne.s32.totalorder %s16_s13, %s134_s14  ;;  %p140_p2 = scmp.lt.s32.totalorder %s134_s14, %s134_s14 }
   0x6   :  { %p141_p3 = por %p140_p2, %p139_p1 }
   0x8   :  { %p142_p4 = pnand %p141_p3, %p135_p0 }
   0xa   :  { %145 = shalt.err (!%p142_p4)
}
   0xb   :  { %s171_s15 = smov 128   ;;  %s172_s16 = smov 8  }
   0xc   :  { %21 = dma.hbm_to_vmem [thread:$0]  %s212_s0, 256, %s16_s13, [#allocation3], %s171_s15, %s171_s15, %s172_s16  }
   0xd   :  { %166 = dma.done.wait [#allocation3], 256  }
   0xe   :  { %167 = vsyncadd [#allocation3], 4294967040  ;;  %v29_v0 = vld [vmem:[#allocation2] sm:$0xff]  ;;  %v30_v1 = vld [vmem:[#allocation2 + $0x8] sm:$0xff]  ;;  %s173_s22 = smov [#allocation5]  }
   0xf   :  { %31 = vadd.xlane.f32.xlu0 %v29_v0  ;;  %v112_v32 = vld [vmem:[%s213_s1] ss:$0 sm:$0xff]  ;;  %s100_s23 = sshll.u32 %s173_s22, 4  ;;  %s101_s23 = int_to_ptr.vmem [resolvable:$true] %s100_s23 }
  0x10   :  { %v113_v35 = vld [vmem:[%s214_s2] ss:$0 sm:$0xff]  ;;  %s146_s24 = scalar_lea.vmem %s101_s23, 256  ;;  %p151_p6 = scmp.lt.s32.totalorder %s101_s23, %s101_s23 }
  0x11   :  { %p147_p5 = scmp.ne.s32.totalorder %s101_s23, %s146_s24  ;;  %p152_p7 = scmp.lt.s32.totalorder %s146_s24, %s146_s24 }
  0x13   :  { %33 = vadd.xlane.f32.xlu0 %v30_v1  ;;  %p153_p8 = por %p152_p7, %p151_p6 }
  0x15   :  { %p154_p9 = pnand %p153_p8, %p147_p5 }
  0x98   :  { %v32_v2 = vpop.xlane.xlu0 %31 }
  0x99   :  { %v35_v3 = vmul.f32 0.03125, %v32_v2 }
  0x9b   :  { %v37_v4 = vsub.f32 %v29_v0, %v35_v3  ;;  %v45_v10 = vmul.f32 %v35_v3, %v35_v3 }
  0x9c   :  { %v34_v5 = vpop.xlane.xlu0 %33 }
  0x9d   :  { %v36_v6 = vmul.f32 0.03125, %v34_v5  ;;  %v39_v7 = vmul.f32 %v37_v4, %v37_v4  ;;  %v47_v11 = vmul.f32 96.0, %v45_v10  ;;  %v80_v33 = vmul.f32 %v112_v32, %v37_v4 }
  0x9f   :  { %v38_v8 = vsub.f32 %v30_v1, %v36_v6  ;;  %41 = vadd.xlane.f32.xlu1 %v39_v7  ;;  %v46_v12 = vmul.f32 %v36_v6, %v36_v6 }
  0xa1   :  { %v40_v9 = vmul.f32 %v38_v8, %v38_v8  ;;  %v48_v16 = vmul.f32 96.0, %v46_v12  ;;  %v81_v38 = vmul.f32 %v112_v32, %v38_v8 }
  0xa3   :  { %43 = vadd.xlane.f32.xlu1 %v40_v9 }
 0x128   :  { %v42_v13 = vpop.xlane.xlu1 %41 }
 0x129   :  { %v49_v14 = vsub.f32 %v42_v13, %v47_v11 }
 0x12b   :  { %v51_v15 = vmul.f32 0.032258064, %v49_v14 }
 0x12c   :  { %v44_v17 = vpop.xlane.xlu1 %43 }
 0x12d   :  { %118 = vrsqrt.f32 %v51_v15  ;;  %v50_v18 = vsub.f32 %v44_v17, %v48_v16  ;;  %vm55_vm0 = vcmp.eq.f32.partialorder %v51_v15, inf  ;;  %v58_v22 = vand.u32 2147483648, %v51_v15 }
 0x12e   :  { %vm57_vm1 = vcmp.eq.f32.partialorder %v51_v15, 0.0 }
 0x12f   :  { %v52_v19 = vmul.f32 0.032258064, %v50_v18 }
 0x131   :  { %120 = vrsqrt.f32 %v52_v19  ;;  %vm62_vm2 = vcmp.eq.f32.partialorder %v52_v19, inf  ;;  %v65_v28 = vand.u32 2147483648, %v52_v19  ;;  %vm64_vm3 = vcmp.eq.f32.partialorder %v52_v19, 0.0 }
 0x13a   :  { %v119_v20 = vpop.eup %118 }
 0x13b   :  { %v54_v21 = vmul.f32 %v119_v20, %v51_v15 }
 0x13d   :  { %v56_v23 = vsel %vm55_vm0, %v51_v15, %v54_v21 }
 0x13e   :  { %v59_v24 = vsel %vm57_vm1, %v58_v22, %v56_v23  ;;  %v121_v25 = vpop.eup %120 }
 0x13f   :  { %v67_v26 = vadd.f32 1e-06, %v59_v24  ;;  %v61_v27 = vmul.f32 %v121_v25, %v52_v19 }
 0x141   :  { %122 = vrcp.f32 %v67_v26  ;;  %v63_v29 = vsel %vm62_vm2, %v52_v19, %v61_v27 }
 0x142   :  { %v66_v30 = vsel %vm64_vm3, %v65_v28, %v63_v29 }
 0x143   :  { %v68_v31 = vadd.f32 1e-06, %v66_v30 }
 0x145   :  { %124 = vrcp.f32 %v68_v31 }
 0x14e   :  { %v123_v34 = vpop.eup %122 }
 0x14f   :  { %v82_v36 = vmul.f32 %v123_v34, %v80_v33 }
 0x151   :  { %v91_v37 = vadd.f32 %v113_v35, %v82_v36 }
 0x152   :  { %v125_v39 = vpop.eup %124 }
 0x153   :  { %93 = vst [vmem:[#allocation5] sm:$0xff] %v91_v37  ;;  %v83_v40 = vmul.f32 %v125_v39, %v81_v38 }
 0x155   :  { %v92_v41 = vadd.f32 %v113_v35, %v83_v40 }
 0x157   :  { %94 = vst [vmem:[#allocation5 + $0x8] sm:$0xff] %v92_v41 }
 0x158   :  { %157 = shalt.err (!%p154_p9)
}
 0x159   :  { %106 = dma.vmem_to_hbm [thread:$0]  %s101_s23, 256, %s215_s3, [#allocation4], %s171_s15, %s171_s15, %s172_s16  }
 0x15a   :  { %168 = dma.done.wait [#allocation4], 256  }
 0x15b   :  { %169 = vsyncadd [#allocation4], 4294967040 }
 0x15c   :  { %110 = vsyncpa [#allocation3], 1 }
 0x15d   :  { %111 = vsyncpa [#allocation4], 1 }

</bundles_post_ra>
